<compile_context>
chip_gen: v5e
topology: v5e:2x2
jax: 0.10.0
libtpu: 0.0.40
codegen_flags: <defaults>
</compile_context>

<pallas_src>
import functools

import jax
import jax.numpy as jnp
from jax.experimental import pallas as pl
from jax.experimental.pallas import tpu as pltpu


def _round_up(n, m):
    return ((n + m - 1) // m) * m


def _generator_kernel(x_ref,
                      w1_ref, b1_ref,
                      w2_ref, b2_ref,
                      w3_ref, b3_ref,
                      w4_ref, b4_ref,
                      out_ref,
                      *, compute_dtype):
    # x tile arrives already in compute_dtype (cast once in the wrapper).
    x = x_ref[...]

    # fc1 + ReLU                                   (MXU, f32 accumulation)
    h = jnp.dot(x, w1_ref[...], preferred_element_type=jnp.float32) + b1_ref[...]
    h = jnp.maximum(h, 0.0)                                    # (TM, H) f32

    # fc2 + ReLU + residual
    h2 = jnp.dot(h.astype(compute_dtype), w2_ref[...],
                 preferred_element_type=jnp.float32) + b2_ref[...]
    h = jnp.maximum(h2, 0.0) + h

    # fc3 + ReLU + residual
    h3 = jnp.dot(h.astype(compute_dtype), w3_ref[...],
                 preferred_element_type=jnp.float32) + b3_ref[...]
    h = jnp.maximum(h3, 0.0) + h

    # fc4 (no activation) -> lane-dense (TM, weight_dim*y_dim) slab
    out = jnp.dot(h.astype(compute_dtype), w4_ref[...],
                  preferred_element_type=jnp.float32) + b4_ref[...]
    out_ref[...] = out.astype(out_ref.dtype)


def _pick_block_m(batch):
    """Large tiles (step-overhead amortization) but >=2 grid steps for v7x
    once the batch is big enough to split on 128-row boundaries."""
    if batch < 128:
        return _round_up(batch, 8)            # single (possibly partial) tile
    if batch < 256:
        return 128
    return min(1024, _round_up(pl.cdiv(batch, 2), 128))


def generator_forward(x, params, weight_dim, y_dim, *,
                      block_m=None,
                      compute_dtype=jnp.bfloat16,
                      out_dtype=jnp.float32,
                      min_pallas_batch=0):
    """x: (batch, latent_dim).  params: dict of transposed weights (in, out)
    and (1, out) biases — ideally pre-cast with prepare_params().

    compute_dtype: dtype of the MXU operands (bf16 recommended on v6e/v7x);
    accumulation, bias, ReLU and residual math always stay in float32.
    out_dtype: dtype of the HBM output (bf16 halves writeback on v5e/v6e).
    """
    batch, latent = x.shape
    out_features = weight_dim * y_dim

    # Tiny-batch escape hatch: pallas_call launch + DMA setup dominates a
    # single ~8-row tile; plain XLA is as fast.  Off by default so the kernel
    # path is always exercised.
    if batch < min_pallas_batch:
        ref = reference_forward(x, params, weight_dim, y_dim, compute_dtype)
        return ref.astype(out_dtype)

    if block_m is None:
        block_m = _pick_block_m(batch)
    block_m = max(8, _round_up(block_m, 8))

    # No jnp.pad of x: the (8,128) rule applies to block_shape, not the array.
    # Pallas pads partial edge tiles itself; rows are independent so garbage
    # rows in the padded region only produce dropped output rows.
    grid = (pl.cdiv(batch, block_m),)

    # Feed the MXU operands in compute_dtype.  These casts are no-ops when the
    # caller already stores x / weights in compute_dtype (prepare_params).
    if x.dtype != compute_dtype:
        x = x.astype(compute_dtype)

    def cast_w(w):
        return w if w.dtype == compute_dtype else w.astype(compute_dtype)

    w1, w2, w3, w4 = (cast_w(params[k]) for k in ("w1", "w2", "w3", "w4"))
    b1, b2, b3, b4 = (params[k] for k in ("b1", "b2", "b3", "b4"))

    # Weights / biases: constant block index -> loaded once, VMEM-resident
    # across all grid steps.
    def resident(shape):
        nd = len(shape)
        return pl.BlockSpec(shape, lambda i, _n=nd: (0,) * _n)

    out = pl.pallas_call(
        functools.partial(_generator_kernel, compute_dtype=compute_dtype),
        out_shape=jax.ShapeDtypeStruct((batch, out_features), out_dtype),
        grid=grid,
        in_specs=[
            pl.BlockSpec((block_m, latent), lambda i: (i, 0)),
            resident(w1.shape), resident(b1.shape),
            resident(w2.shape), resident(b2.shape),
            resident(w3.shape), resident(b3.shape),
            resident(w4.shape), resident(b4.shape),
        ],
        # Lane-dense output slab (weight_dim*y_dim = 128 lanes).
        out_specs=pl.BlockSpec((block_m, out_features), lambda i: (i, 0)),
        compiler_params=pltpu.CompilerParams(
            dimension_semantics=("parallel",)),
    )(x, w1, b1, w2, b2, w3, b3, w4, b4)

    return out.reshape(batch, weight_dim, y_dim)


def init_params(key, latent_dim, n_hidden, weight_dim, y_dim):
    """Deterministic init matching nn.Linear's U(-1/sqrt(fan_in), ...).
    Weights stored transposed (in, out) so the kernel computes x @ W directly
    (equivalent to PyTorch's x @ W.T).  Biases stored as (1, out) rows."""
    ks = jax.random.split(key, 8)

    def linear(kw, kb, fan_in, fan_out):
        bound = 1.0 / jnp.sqrt(fan_in)
        w = jax.random.uniform(kw, (fan_in, fan_out), jnp.float32, -bound, bound)
        b = jax.random.uniform(kb, (1, fan_out), jnp.float32, -bound, bound)
        return w, b

    out_features = weight_dim * y_dim
    w1, b1 = linear(ks[0], ks[1], latent_dim, n_hidden)
    w2, b2 = linear(ks[2], ks[3], n_hidden, n_hidden)
    w3, b3 = linear(ks[4], ks[5], n_hidden, n_hidden)
    w4, b4 = linear(ks[6], ks[7], n_hidden, out_features)
    return dict(w1=w1, b1=b1, w2=w2, b2=b2, w3=w3, b3=b3, w4=w4, b4=b4)


def prepare_params(params, compute_dtype=jnp.bfloat16):
    """Cast the weight matrices to the MXU compute dtype ONCE, outside the hot
    path (perf review).  Biases stay float32 for the VPU adds."""
    out = dict(params)
    for k in ("w1", "w2", "w3", "w4"):
        out[k] = params[k].astype(compute_dtype)
    return out


def reference_forward(x, params, weight_dim, y_dim, compute_dtype=jnp.float32):
    """Pure-JAX reference.  With compute_dtype=bf16 it mirrors the kernel's
    MXU-operand cast exactly (f32 accumulation, f32 elementwise)."""
    def dot(a, w):
        return jnp.dot(a.astype(compute_dtype), w.astype(compute_dtype),
                       preferred_element_type=jnp.float32)

    b1 = params["b1"].astype(jnp.float32)
    b2 = params["b2"].astype(jnp.float32)
    b3 = params["b3"].astype(jnp.float32)
    b4 = params["b4"].astype(jnp.float32)
    h = jnp.maximum(dot(x, params["w1"]) + b1, 0.0)
    h = jnp.maximum(dot(h, params["w2"]) + b2, 0.0) + h
    h = jnp.maximum(dot(h, params["w3"]) + b3, 0.0) + h
    out = dot(h, params["w4"]) + b4
    return out.reshape(x.shape[0], weight_dim, y_dim)


if __name__ == "__main__":
    latent_dim, n_hidden, weight_dim, y_dim = 32, 64, 16, 8

    key = jax.random.PRNGKey(0)
    k_x, k_p, k_x2 = jax.random.split(key, 3)
    params = init_params(k_p, latent_dim, n_hidden, weight_dim, y_dim)

    # --- small batch, exact f32 MXU semantics vs f32 reference (tight) ------
    batch = 8
    x = jax.random.normal(k_x, (batch, latent_dim), jnp.float32)
    out_f32 = jax.block_until_ready(
        generator_forward(x, params, weight_dim, y_dim,
                          compute_dtype=jnp.float32))
    ref_f32 = reference_forward(x, params, weight_dim, y_dim, jnp.float32)
    assert out_f32.shape == (batch, weight_dim, y_dim)
    assert jnp.allclose(out_f32, ref_f32, atol=1e-5, rtol=1e-5)

    # --- default fast path: pre-cast bf16 weights + bf16 x, f32 accumulate --
    params_bf16 = prepare_params(params, jnp.bfloat16)
    out_bf16 = jax.block_until_ready(
        generator_forward(x, params_bf16, weight_dim, y_dim))
    ref_bf16 = reference_forward(x, params, weight_dim, y_dim, jnp.bfloat16)
    assert out_bf16.shape == (batch, weight_dim, y_dim)
    assert jnp.allclose(out_bf16, ref_bf16, atol=1e-4, rtol=1e-4)
    assert jnp.allclose(out_bf16, ref_f32, atol=1e-1, rtol=5e-2)

    # --- larger batch: multi-step grid + partial last tile (no jnp.pad) -----
    batch2 = 300                      # block_m=256 -> grid=(2,), last tile partial
    x2 = jax.random.normal(k_x2, (batch2, latent_dim), jnp.float32)
    out2 = jax.block_until_ready(
        generator_forward(x2, params_bf16, weight_dim, y_dim))
    ref2 = reference_forward(x2, params, weight_dim, y_dim, jnp.bfloat16)
    assert out2.shape == (batch2, weight_dim, y_dim)
    assert jnp.allclose(out2, ref2, atol=1e-4, rtol=1e-4)

    print("KERNEL_OK")
</pallas_src>

<mosaic_0001>
module attributes {stable_mosaic.version = 11 : i64} {
  func.func @_generator_kernel(%arg0: i32, %arg1: memref<8x32xf32, #tpu.memory_space<vmem>>, %arg2: memref<32x64xf32, #tpu.memory_space<vmem>>, %arg3: memref<1x64xf32, #tpu.memory_space<vmem>>, %arg4: memref<64x64xf32, #tpu.memory_space<vmem>>, %arg5: memref<1x64xf32, #tpu.memory_space<vmem>>, %arg6: memref<64x64xf32, #tpu.memory_space<vmem>>, %arg7: memref<1x64xf32, #tpu.memory_space<vmem>>, %arg8: memref<64x128xf32, #tpu.memory_space<vmem>>, %arg9: memref<1x128xf32, #tpu.memory_space<vmem>>, %arg10: memref<8x128xf32, #tpu.memory_space<vmem>>) attributes {dimension_semantics = [#tpu.dimension_semantics<parallel>], iteration_bounds = array<i64: 1>, scalar_prefetch = 0 : i64, scratch_operands = 0 : i64, tpu.core_type = #tpu.core_type<tc>, window_params = [{transform_indices = @transform_0, window_bounds = array<i64: 8, 32>}, {pipeline_mode = #tpu.pipeline_mode<synchronous>, transform_indices = @transform_1, window_bounds = array<i64: 32, 64>}, {pipeline_mode = #tpu.pipeline_mode<synchronous>, transform_indices = @transform_2, window_bounds = array<i64: 1, 64>}, {pipeline_mode = #tpu.pipeline_mode<synchronous>, transform_indices = @transform_3, window_bounds = array<i64: 64, 64>}, {pipeline_mode = #tpu.pipeline_mode<synchronous>, transform_indices = @transform_4, window_bounds = array<i64: 1, 64>}, {pipeline_mode = #tpu.pipeline_mode<synchronous>, transform_indices = @transform_5, window_bounds = array<i64: 64, 64>}, {pipeline_mode = #tpu.pipeline_mode<synchronous>, transform_indices = @transform_6, window_bounds = array<i64: 1, 64>}, {pipeline_mode = #tpu.pipeline_mode<synchronous>, transform_indices = @transform_7, window_bounds = array<i64: 64, 128>}, {pipeline_mode = #tpu.pipeline_mode<synchronous>, transform_indices = @transform_8, window_bounds = array<i64: 1, 128>}, {transform_indices = @transform_9, window_bounds = array<i64: 8, 128>}]} {
    %c0 = arith.constant 0 : index
    %c0_0 = arith.constant 0 : index
    %0 = vector.load %arg1[%c0, %c0_0] : memref<8x32xf32, #tpu.memory_space<vmem>>, vector<8x32xf32>
    %c0_1 = arith.constant 0 : index
    %c0_2 = arith.constant 0 : index
    %1 = vector.load %arg2[%c0_1, %c0_2] : memref<32x64xf32, #tpu.memory_space<vmem>>, vector<32x64xf32>
    %cst = arith.constant dense<0.000000e+00> : vector<8x64xf32>
    %2 = tpu.matmul %0, %1, %cst {dimension_numbers = #tpu.dot_dimension_numbers<[1], [0], [0], [1], [0, 0, 1, 1], [], []>} : vector<8x32xf32>, vector<32x64xf32>, vector<8x64xf32> -> vector<8x64xf32>
    %c0_3 = arith.constant 0 : index
    %c0_4 = arith.constant 0 : index
    %3 = vector.load %arg3[%c0_3, %c0_4] : memref<1x64xf32, #tpu.memory_space<vmem>>, vector<1x64xf32>
    %4 = vector.broadcast %3 : vector<1x64xf32> to vector<8x64xf32>
    %5 = arith.addf %2, %4 : vector<8x64xf32>
    %cst_5 = arith.constant 0.000000e+00 : f32
    %6 = vector.broadcast %cst_5 : f32 to vector<8x64xf32>
    %7 = arith.maximumf %5, %6 : vector<8x64xf32>
    %c0_6 = arith.constant 0 : index
    %c0_7 = arith.constant 0 : index
    %8 = vector.load %arg4[%c0_6, %c0_7] : memref<64x64xf32, #tpu.memory_space<vmem>>, vector<64x64xf32>
    %cst_8 = arith.constant dense<0.000000e+00> : vector<8x64xf32>
    %9 = tpu.matmul %7, %8, %cst_8 {dimension_numbers = #tpu.dot_dimension_numbers<[1], [0], [0], [1], [0, 0, 1, 1], [], []>} : vector<8x64xf32>, vector<64x64xf32>, vector<8x64xf32> -> vector<8x64xf32>
    %c0_9 = arith.constant 0 : index
    %c0_10 = arith.constant 0 : index
    %10 = vector.load %arg5[%c0_9, %c0_10] : memref<1x64xf32, #tpu.memory_space<vmem>>, vector<1x64xf32>
    %11 = vector.broadcast %10 : vector<1x64xf32> to vector<8x64xf32>
    %12 = arith.addf %9, %11 : vector<8x64xf32>
    %cst_11 = arith.constant 0.000000e+00 : f32
    %13 = vector.broadcast %cst_11 : f32 to vector<8x64xf32>
    %14 = arith.maximumf %12, %13 : vector<8x64xf32>
    %15 = arith.addf %14, %7 : vector<8x64xf32>
    %c0_12 = arith.constant 0 : index
    %c0_13 = arith.constant 0 : index
    %16 = vector.load %arg6[%c0_12, %c0_13] : memref<64x64xf32, #tpu.memory_space<vmem>>, vector<64x64xf32>
    %cst_14 = arith.constant dense<0.000000e+00> : vector<8x64xf32>
    %17 = tpu.matmul %15, %16, %cst_14 {dimension_numbers = #tpu.dot_dimension_numbers<[1], [0], [0], [1], [0, 0, 1, 1], [], []>} : vector<8x64xf32>, vector<64x64xf32>, vector<8x64xf32> -> vector<8x64xf32>
    %c0_15 = arith.constant 0 : index
    %c0_16 = arith.constant 0 : index
    %18 = vector.load %arg7[%c0_15, %c0_16] : memref<1x64xf32, #tpu.memory_space<vmem>>, vector<1x64xf32>
    %19 = vector.broadcast %18 : vector<1x64xf32> to vector<8x64xf32>
    %20 = arith.addf %17, %19 : vector<8x64xf32>
    %cst_17 = arith.constant 0.000000e+00 : f32
    %21 = vector.broadcast %cst_17 : f32 to vector<8x64xf32>
    %22 = arith.maximumf %20, %21 : vector<8x64xf32>
    %23 = arith.addf %22, %15 : vector<8x64xf32>
    %c0_18 = arith.constant 0 : index
    %c0_19 = arith.constant 0 : index
    %24 = vector.load %arg8[%c0_18, %c0_19] : memref<64x128xf32, #tpu.memory_space<vmem>>, vector<64x128xf32>
    %cst_20 = arith.constant dense<0.000000e+00> : vector<8x128xf32>
    %25 = tpu.matmul %23, %24, %cst_20 {dimension_numbers = #tpu.dot_dimension_numbers<[1], [0], [0], [1], [0, 0, 1, 1], [], []>} : vector<8x64xf32>, vector<64x128xf32>, vector<8x128xf32> -> vector<8x128xf32>
    %c0_21 = arith.constant 0 : index
    %c0_22 = arith.constant 0 : index
    %26 = vector.load %arg9[%c0_21, %c0_22] : memref<1x128xf32, #tpu.memory_space<vmem>>, vector<1x128xf32>
    %27 = vector.broadcast %26 : vector<1x128xf32> to vector<8x128xf32>
    %28 = arith.addf %25, %27 : vector<8x128xf32>
    %c0_23 = arith.constant 0 : index
    %c0_24 = arith.constant 0 : index
    %29 = vector.load %arg10[%c0_23, %c0_24] : memref<8x128xf32, #tpu.memory_space<vmem>>, vector<8x128xf32>
    tpu.vector_store %arg10[%c0_23, %c0_24], %28 {strides = array<i32>} : memref<8x128xf32, #tpu.memory_space<vmem>>, vector<8x128xf32>,
    return
  }
  func.func @transform_0(%arg0: i32) -> (i32, i32) {
    %c0_i32 = arith.constant 0 : i32
    %c0_i32_0 = arith.constant 0 : i32
    return %arg0, %c0_i32 : i32, i32
  }
  func.func @transform_1(%arg0: i32) -> (i32, i32) {
    %c0_i32 = arith.constant 0 : i32
    %c0_i32_0 = arith.constant 0 : i32
    %c0_i32_1 = arith.constant 0 : i32
    return %c0_i32, %c0_i32_0 : i32, i32
  }
  func.func @transform_2(%arg0: i32) -> (i32, i32) {
    %c0_i32 = arith.constant 0 : i32
    %c0_i32_0 = arith.constant 0 : i32
    %c0_i32_1 = arith.constant 0 : i32
    return %c0_i32, %c0_i32_0 : i32, i32
  }
  func.func @transform_3(%arg0: i32) -> (i32, i32) {
    %c0_i32 = arith.constant 0 : i32
    %c0_i32_0 = arith.constant 0 : i32
    %c0_i32_1 = arith.constant 0 : i32
    return %c0_i32, %c0_i32_0 : i32, i32
  }
  func.func @transform_4(%arg0: i32) -> (i32, i32) {
    %c0_i32 = arith.constant 0 : i32
    %c0_i32_0 = arith.constant 0 : i32
    %c0_i32_1 = arith.constant 0 : i32
    return %c0_i32, %c0_i32_0 : i32, i32
  }
  func.func @transform_5(%arg0: i32) -> (i32, i32) {
    %c0_i32 = arith.constant 0 : i32
    %c0_i32_0 = arith.constant 0 : i32
    %c0_i32_1 = arith.constant 0 : i32
    return %c0_i32, %c0_i32_0 : i32, i32
  }
  func.func @transform_6(%arg0: i32) -> (i32, i32) {
    %c0_i32 = arith.constant 0 : i32
    %c0_i32_0 = arith.constant 0 : i32
    %c0_i32_1 = arith.constant 0 : i32
    return %c0_i32, %c0_i32_0 : i32, i32
  }
  func.func @transform_7(%arg0: i32) -> (i32, i32) {
    %c0_i32 = arith.constant 0 : i32
    %c0_i32_0 = arith.constant 0 : i32
    %c0_i32_1 = arith.constant 0 : i32
    return %c0_i32, %c0_i32_0 : i32, i32
  }
  func.func @transform_8(%arg0: i32) -> (i32, i32) {
    %c0_i32 = arith.constant 0 : i32
    %c0_i32_0 = arith.constant 0 : i32
    %c0_i32_1 = arith.constant 0 : i32
    return %c0_i32, %c0_i32_0 : i32, i32
  }
  func.func @transform_9(%arg0: i32) -> (i32, i32) {
    %c0_i32 = arith.constant 0 : i32
    %c0_i32_0 = arith.constant 0 : i32
    return %arg0, %c0_i32 : i32, i32
  }
}

</mosaic_0001>

<bundles_post_ra>
// kernel: tpu_custom_call.1
= control target key start
LH: loop header
LB: loop body
LE: loop exit
PB: predicated region body
PF: predicated region fallthrough
CT: control target
= control target key end

     0   :  { %14 = vsyncpa [#allocation3], 0  ;;  %s532_s0 = inlined_call_operand.hbm [shape: f32[8,32], index: 0, kind: input, shape index: {}]   ;;  %s533_s1 = inlined_call_operand.hbm [shape: f32[32,64], index: 1, kind: input, shape index: {}]   ;;  %s534_s2 = inlined_call_operand.vmem [shape: f32[1,64], index: 2, kind: input, shape index: {}]   ;;  %s535_s3 = inlined_call_operand.hbm [shape: f32[64,64], index: 3, kind: input, shape index: {}]   ;;  %s536_s4 = inlined_call_operand.vmem [shape: f32[1,64], index: 4, kind: input, shape index: {}]   ;;  %s537_s5 = inlined_call_operand.hbm [shape: f32[64,64], index: 5, kind: input, shape index: {}]   ;;  %s538_s6 = inlined_call_operand.vmem [shape: f32[1,64], index: 6, kind: input, shape index: {}]   ;;  %s539_s7 = inlined_call_operand.hbm [shape: f32[64,128], index: 7, kind: input, shape index: {}]   ;;  %s540_s8 = inlined_call_operand.vmem [shape: f32[1,128], index: 8, kind: input, shape index: {}]   ;;  %s541_s9 = inlined_call_operand.hbm [shape: f32[8,128], index: 9, kind: output, shape index: {}]  }
   0x1   :  { %15 = vsyncpa [#allocation6], 0 }
   0x2   :  { %16 = vsyncpa [#allocation9], 0  ;;  %s33_s11 = sshll.u32 %s533_s1, 4  ;;  %s34_s11 = int_to_ptr.hbm [resolvable:$true] %s33_s11 }
   0x3   :  { %17 = vsyncpa [#allocation4], 0  ;;  %s441_s12 = smov [#allocation5]   ;;  %s63_s16 = sshll.u32 %s537_s5, 4  ;;  %s64_s16 = int_to_ptr.hbm [resolvable:$true] %s63_s16 }
   0x4   :  { %s35_s13 = sshll.u32 %s441_s12, 4  ;;  %s442_s17 = smov 128   ;;  %s36_s13 = int_to_ptr.vmem [resolvable:$true] %s35_s13 }
   0x5   :  { %s443_s18 = smov 8   ;;  %s444_s19 = smov [#allocation8]  }
   0x6   :  { %41 = dma.hbm_to_vmem [thread:$0]  %s34_s11, 512, %s36_s13, [#allocation6], %s442_s17, %s442_s17, %s443_s18  }
   0x7   :  { %s65_s20 = sshll.u32 %s444_s19, 4  ;;  %s23_s23 = sshll.u32 %s532_s0, 4  ;;  %s66_s20 = int_to_ptr.vmem [resolvable:$true] %s65_s20  ;;  %s24_s23 = int_to_ptr.hbm [resolvable:$true] %s23_s23 }
   0x8   :  { %71 = dma.hbm_to_vmem [thread:$0]  %s64_s16, 1024, %s66_s20, [#allocation9], %s442_s17, %s442_s17, %s443_s18  }
   0x9   :  { %s48_s25 = sshll.u32 %s535_s3, 4  ;;  %s445_s26 = smov [#allocation2]   ;;  %s49_s25 = int_to_ptr.hbm [resolvable:$true] %s48_s25 }
   0xa   :  { %s25_s27 = sshll.u32 %s445_s26, 4  ;;  %s446_s5 = smov [#allocation7]   ;;  %s26_s27 = int_to_ptr.vmem [resolvable:$true] %s25_s27 }
   0xb   :  { %28 = dma.hbm_to_vmem [thread:$0]  %s24_s23, 128, %s26_s27, [#allocation3]  }
   0xc   :  { %s50_s28 = sshll.u32 %s446_s5, 4  ;;  %s78_s10 = sshll.u32 %s539_s7, 4  ;;  %s51_s28 = int_to_ptr.vmem [resolvable:$true] %s50_s28  ;;  %s79_s10 = int_to_ptr.hbm [resolvable:$true] %s78_s10 }
   0xd   :  { %56 = dma.hbm_to_vmem [thread:$0]  %s49_s25, 1024, %s51_s28, [#allocation6], %s442_s17, %s442_s17, %s443_s18  }
   0xe   :  { %s447_s0 = smov [#allocation10]  }
   0xf   :  { %s80_s11 = sshll.u32 %s447_s0, 4  ;;  %s81_s11 = int_to_ptr.vmem [resolvable:$true] %s80_s11 }
  0x10   :  { %86 = dma.hbm_to_vmem [thread:$0]  %s79_s10, 1024, %s81_s11, [#allocation9], %s442_s17, %s442_s17, %s443_s18  }
  0x11   :  { %433 = dma.done.wait [#allocation3], 128  }
  0x12   :  { %434 = vsyncadd [#allocation3], 4294967168 }
  0x13   :  { %435 = dma.done.wait [#allocation6], 1536  }
  0x14   :  { %436 = vsyncadd [#allocation6], 4294965760 }
  0x15   :  { %437 = dma.done.wait [#allocation9], 2048  }
  0x16   :  { %438 = vsyncadd [#allocation9], 4294965248  ;;  %v113_v0 = vld [vmem:[#allocation5 + $0x18] sm:$0xff]  ;;  %v112_v1 = vld [vmem:[#allocation5 + $0x10] sm:$0xff]  ;;  %vm118_vm0 = vcmask 261120   ;;  %vm155_vm1 = vcmask 523264  }
  0x17   :  { %134 = vmatpush.msra.mxu0 %v113_v0  ;;  %v150_v2 = vld [vmem:[#allocation7 + $0x38] sm:$0xff]  ;;  %v111_v3 = vld [vmem:[#allocation5 + $0x8] sm:$0xff]  ;;  %v149_v4 = vld [vmem:[#allocation7 + $0x30] sm:$0xff]  ;;  %s448_s16 = smov [#allocation11]   ;;  %s261_s20 = sshll.u32 %s541_s9, 4  ;;  %s262_s20 = int_to_ptr.hbm [resolvable:$true] %s261_s20 }
  0x18   :  { %167 = vmatpush.msra.mxu1 %v150_v2  ;;  %v110_v5 = vld [vmem:[#allocation5] sm:$0xff]  ;;  %v148_v6 = vld [vmem:[#allocation7 + $0x28] sm:$0xff]  ;;  %v109_v7 = vld [vmem:[#allocation2] sm:$0xff]  ;;  %s259_s17 = sshll.u32 %s448_s16, 4  ;;  %s260_s17 = int_to_ptr.vmem [resolvable:$true] %s259_s17 }
  0x19   :  { %135 = vmatpush.msra.mxu0 %v112_v1  ;;  %v147_v8 = vld [vmem:[#allocation7 + $0x20] sm:$0xff]  ;;  %v146_v9 = vld [vmem:[#allocation7 + $0x18] sm:$0xff]  ;;  %v145_v10 = vld [vmem:[#allocation7 + $0x10] sm:$0xff] }
  0x1a   :  { %168 = vmatpush.msra.mxu1 %v149_v4  ;;  %v144_v11 = vld [vmem:[#allocation7 + $0x8] sm:$0xff]  ;;  %v143_v12 = vld [vmem:[#allocation7] sm:$0xff]  ;;  %v188_v13 = vld [vmem:[#allocation8 + $0x38] sm:$0xff] }
  0x1b   :  { %136 = vmatpush.msra.mxu0 %v111_v3  ;;  %v187_v14 = vld [vmem:[#allocation8 + $0x30] sm:$0xff]  ;;  %204 = vmatpush.msra.mxu2 %v188_v13  ;;  %v186_v15 = vld [vmem:[#allocation8 + $0x28] sm:$0xff]  ;;  %v185_v16 = vld [vmem:[#allocation8 + $0x20] sm:$0xff] }
  0x1c   :  { %169 = vmatpush.msra.mxu1 %v148_v6  ;;  %v285_v17 = vld [vmem:[%s534_s2] ss:$0 sm:$0xff]  ;;  %v183_v22 = vld [vmem:[#allocation8 + $0x10] sm:$0xff]  ;;  %v182_v23 = vld [vmem:[#allocation8 + $0x8] sm:$0xff] }
  0x1d   :  { %137 = vmatpush.msra.mxu0 %v110_v5  ;;  %205 = vmatpush.msra.mxu2 %v187_v14  ;;  %v184_v21 = vld [vmem:[#allocation8 + $0x18] sm:$0xff]  ;;  %v181_v24 = vld [vmem:[#allocation8] sm:$0xff]  ;;  %v224_v26 = vld [vmem:[#allocation10 + $0x30] sm:$0xff] }
  0x1e   :  { %273 = vmatmul.msk.f32.vlgmr.msra.gmra.mxu0 %vm118_vm0, %v109_v7  ;;  %170 = vmatpush.msra.mxu1 %v147_v8  ;;  %v225_v25 = vld [vmem:[#allocation10 + $0x38] sm:$0xff]  ;;  %v223_v27 = vld [vmem:[#allocation10 + $0x28] sm:$0xff]  ;;  %v222_v28 = vld [vmem:[#allocation10 + $0x20] sm:$0xff] }
  0x1f   :  { %206 = vmatpush.msra.mxu2 %v186_v15  ;;  %241 = vmatpush.msra.mxu3 %v225_v25  ;;  %v286_v29 = vld [vmem:[%s536_s4] ss:$0 sm:$0xff]  ;;  %v220_v35 = vld [vmem:[#allocation10 + $0x10] sm:$0xff]  ;;  %v219_v36 = vld [vmem:[#allocation10 + $0x8] sm:$0xff] }
  0x20   :  { %171 = vmatpush.msra.mxu1 %v146_v9  ;;  %v221_v34 = vld [vmem:[#allocation10 + $0x18] sm:$0xff]  ;;  %v218_v37 = vld [vmem:[#allocation10] sm:$0xff] }
  0x21   :  { %207 = vmatpush.msra.mxu2 %v185_v16  ;;  %242 = vmatpush.msra.mxu3 %v224_v26  ;;  %v287_v38 = vld [vmem:[%s538_s6] ss:$0 sm:$0xff] }
  0x22   :  { %172 = vmatpush.msra.mxu1 %v145_v10  ;;  %v288_v43 = vld [vmem:[%s540_s8] ss:$0 sm:$0xff] }
  0x23   :  { %208 = vmatpush.msra.mxu2 %v184_v21  ;;  %243 = vmatpush.msra.mxu3 %v223_v27 }
  0x24   :  { %173 = vmatpush.msra.mxu1 %v144_v11 }
  0x25   :  { %209 = vmatpush.msra.mxu2 %v183_v22  ;;  %244 = vmatpush.msra.mxu3 %v222_v28 }
  0x26   :  { %174 = vmatpush.msra.mxu1 %v143_v12 }
  0x27   :  { %210 = vmatpush.msra.mxu2 %v182_v23  ;;  %245 = vmatpush.msra.mxu3 %v221_v34 }
  0x29   :  { %211 = vmatpush.msra.mxu2 %v181_v24  ;;  %246 = vmatpush.msra.mxu3 %v220_v35 }
  0x2b   :  { %247 = vmatpush.msra.mxu3 %v219_v36 }
  0x2d   :  { %248 = vmatpush.msra.mxu3 %v218_v37 }
  0x9b   :  { %v139_v18 = vpop.f32.mrf.mxu0 }
  0x9c   :  { %v140_v19 = vadd.f32 %v285_v17, %v139_v18 }
  0x9e   :  { %v142_v20 = vmax.f32 %v140_v19, 0.0 }
  0xa0   :  { %274 = vmatmul.msk.f32.vlgmr.msra.gmra.mxu1 %vm155_vm1, %v142_v20 }
 0x11d   :  { %v176_v30 = vpop.f32.mrf.mxu1 }
 0x11e   :  { %v177_v31 = vadd.f32 %v286_v29, %v176_v30 }
 0x120   :  { %v179_v32 = vmax.f32 %v177_v31, 0.0 }
 0x122   :  { %v180_v33 = vadd.f32 %v179_v32, %v142_v20 }
 0x124   :  { %275 = vmatmul.msk.f32.vlgmr.msra.gmra.mxu2 %vm155_vm1, %v180_v33 }
 0x1a7   :  { %v213_v39 = vpop.f32.mrf.mxu2 }
 0x1a8   :  { %v214_v40 = vadd.f32 %v287_v38, %v213_v39 }
 0x1aa   :  { %v216_v41 = vmax.f32 %v214_v40, 0.0 }
 0x1ac   :  { %v217_v42 = vadd.f32 %v216_v41, %v180_v33 }
 0x1ae   :  { %276 = vmatmul.msk.f32.vlgmr.msra.gmra.mxu3 %vm155_vm1, %v217_v42 }
 0x231   :  { %v250_v44 = vpop.f32.mrf.mxu3 }
 0x232   :  { %v251_v45 = vadd.f32 %v288_v43, %v250_v44 }
 0x234   :  { %253 = vst [vmem:[#allocation11] sm:$0xff] %v251_v45 }
 0x235   :  { %264 = dma.vmem_to_hbm [thread:$0]  %s260_s17, 128, %s262_s20, [#allocation4]  }
 0x236   :  { %439 = dma.done.wait [#allocation4], 128  }
 0x237   :  { %440 = vsyncadd [#allocation4], 4294967168 }
 0x238   :  { %269 = vsyncpa [#allocation3], 1 }
 0x239   :  { %270 = vsyncpa [#allocation6], 1 }
 0x23a   :  { %271 = vsyncpa [#allocation9], 1 }
 0x23b   :  { %272 = vsyncpa [#allocation4], 1 }

</bundles_post_ra>
